<compile_context>
chip_gen: v7x
topology: tpu7x:2x2x1
jax: 0.10.0
libtpu: 0.0.40
codegen_flags: <defaults>
</compile_context>

<pallas_src>
import functools

import jax
import jax.numpy as jnp
from jax.experimental import pallas as pl
from jax.experimental.pallas import tpu as pltpu

_NEG_BIG = -1.0e30  # "minus infinity" that stays finite under f32 arithmetic


def _ce_head_kernel(x_ref, w_ref, lbl_ref, pred_ref, loss_ref,
                    m_sc, s_sc, picked_sc, *, num_classes, tc):
    j = pl.program_id(1)          # class-tile index (innermost / reduction axis)
    n_c = pl.num_programs(1)

    @pl.when(j == 0)
    def _init():
        m_sc[...] = jnp.full_like(m_sc, _NEG_BIG)
        s_sc[...] = jnp.zeros_like(s_sc)
        picked_sc[...] = jnp.zeros_like(picked_sc)

    # logits for this class tile: bf16 x [tb, D] @ bf16 w [tc, D]^T, f32 acc.
    # NT contraction directly on the MXU -- no weight transpose materialized.
    logits = jax.lax.dot_general(
        x_ref[...], w_ref[...],
        dimension_numbers=(((1,), (1,)), ((), ())),
        preferred_element_type=jnp.float32)                      # [tb, tc] f32

    # Mask class-padding columns so they contribute nothing to max/sum/pred.
    col = jax.lax.broadcasted_iota(jnp.int32, logits.shape, 1) + j * tc
    logits = jnp.where(col < num_classes, logits, _NEG_BIG)

    # Online softmax statistics.
    m_old = m_sc[...]                                            # [tb, 1]
    m_new = jnp.maximum(m_old, jnp.max(logits, axis=-1, keepdims=True))
    a = jnp.exp(m_old - m_new)                                   # rescale factor
    e = jnp.exp(logits - m_new)                                  # [tb, tc]
    s_sc[...] = a * s_sc[...] + jnp.sum(e, axis=-1, keepdims=True)
    m_sc[...] = m_new

    # Picked (true-class) logit via select-sum; no one-hot multiply.
    # TODO(synk): labels outside [0, C) silently contribute 0 (no ignore_index).
    picked_sc[...] += jnp.sum(
        jnp.where(col == lbl_ref[...], logits, 0.0), axis=-1, keepdims=True)

    # Unnormalized predictions: rescale previously written class tiles by `a`,
    # then write this tile's exp values. Every column is overwritten exactly
    # once at its own tile, so initial buffer contents never leak into results.
    pred_ref[...] = pred_ref[...] * a
    start = pl.multiple_of(j * tc, tc)
    pred_ref[:, pl.ds(start, tc)] = e.astype(pred_ref.dtype)

    @pl.when(j == n_c - 1)
    def _finalize():
        s_val = s_sc[...]
        inv_s = pl.reciprocal(s_val, approx=True)        # EUP slot (near free)
        inv_s = inv_s * (2.0 - s_val * inv_s)            # one Newton step
        pred_ref[...] = pred_ref[...] * inv_s
        # per-sample CE loss = logsumexp(logits) - logit[label]
        loss_ref[...] = m_sc[...] + jnp.log(s_val) - picked_sc[...]


def _round_up(a, m):
    return (a + m - 1) // m * m


def ce_head_forward(x, weight, label, *, tb_max=128, tc_max=512,
                    compute_dtype=jnp.bfloat16):
    """x: [B, D] f32, weight: [C, D] f32 (nn.Linear layout), label: [B] int.

    Returns (pred [B, C] f32 softmax, loss scalar f32 mean cross-entropy).
    """
    B, D = x.shape
    C, D_w = weight.shape
    assert D == D_w, "weight must be [out_features, in_features]"

    # Lane/sublane friendly padding.
    B_pad = _round_up(B, 16)
    tb = min(tb_max, B_pad)
    B_pad = _round_up(B_pad, tb)
    D_pad = _round_up(D, 128)
    tc = min(tc_max, _round_up(C, 128))
    C_pad = _round_up(C, tc)

    xp = jnp.pad(x, ((0, B_pad - B), (0, D_pad - D))).astype(compute_dtype)
    wp = jnp.pad(weight, ((0, C_pad - C), (0, D_pad - D))).astype(compute_dtype)
    lblp = jnp.pad(label.astype(jnp.int32), (0, B_pad - B)).reshape(B_pad, 1)

    grid = (B_pad // tb, C_pad // tc)
    kernel = functools.partial(_ce_head_kernel, num_classes=C, tc=tc)

    pred_pad, per_sample = pl.pallas_call(
        kernel,
        out_shape=(
            jax.ShapeDtypeStruct((B_pad, C_pad), jnp.float32),
            jax.ShapeDtypeStruct((B_pad, 1), jnp.float32),
        ),
        grid_spec=pltpu.PrefetchScalarGridSpec(
            num_scalar_prefetch=0,
            grid=grid,
            in_specs=[
                pl.BlockSpec((tb, D_pad), lambda i, j: (i, 0)),   # x rows
                pl.BlockSpec((tc, D_pad), lambda i, j: (j, 0)),   # streamed W
                pl.BlockSpec((tb, 1), lambda i, j: (i, 0)),       # labels
            ],
            out_specs=(
                pl.BlockSpec((tb, C_pad), lambda i, j: (i, 0)),   # pred (resident)
                pl.BlockSpec((tb, 1), lambda i, j: (i, 0)),       # per-sample loss
            ),
            scratch_shapes=[
                pltpu.VMEM((tb, 1), jnp.float32),   # running max m
                pltpu.VMEM((tb, 1), jnp.float32),   # running sum s
                pltpu.VMEM((tb, 1), jnp.float32),   # picked logit
            ],
        ),
        compiler_params=pltpu.CompilerParams(
            dimension_semantics=("parallel", "arbitrary"),
            vmem_limit_bytes=64 * 1024 * 1024,
        ),
    )(xp, wp, lblp)

    pred = pred_pad[:B, :C]
    loss = jnp.mean(per_sample[:B, 0])   # mean over the real batch only
    return pred, loss


def xavier_uniform(key, out_features, in_features):
    # matches nn.init.xavier_uniform_ on a [out, in] weight
    bound = (6.0 / (in_features + out_features)) ** 0.5
    return jax.random.uniform(
        key, (out_features, in_features), dtype=jnp.float32,
        minval=-bound, maxval=bound)


if __name__ == "__main__":
    B, D, C = 8, 32, 16   # batch, in_features (embed), out_features (classes)

    key = jax.random.PRNGKey(0)
    kx, kw, kl = jax.random.split(key, 3)

    x = jax.random.normal(kx, (B, D), dtype=jnp.float32)
    weight = xavier_uniform(kw, C, D)
    label = jax.random.randint(kl, (B,), 0, C, dtype=jnp.int32)

    pred, loss = ce_head_forward(x, weight, label)
    jax.block_until_ready((pred, loss))

    # Sanity check against a plain-JAX reference with the same bf16 matmul /
    # f32-accumulate numerics the kernel uses.
    logits_ref = jax.lax.dot_general(
        x.astype(jnp.bfloat16), weight.astype(jnp.bfloat16),
        dimension_numbers=(((1,), (1,)), ((), ())),
        preferred_element_type=jnp.float32)
    pred_ref = jax.nn.softmax(logits_ref, axis=1)
    loss_ref = jnp.mean(
        jax.nn.logsumexp(logits_ref, axis=1)
        - jnp.take_along_axis(logits_ref, label[:, None], axis=1)[:, 0])

    assert jnp.allclose(pred, pred_ref, atol=1e-4, rtol=1e-4), "pred mismatch"
    assert jnp.allclose(loss, loss_ref, atol=1e-4, rtol=1e-4), "loss mismatch"

    print("KERNEL_OK")
</pallas_src>

<mosaic_0001>
module attributes {stable_mosaic.version = 11 : i64} {
  func.func @_ce_head_kernel(%arg0: i32, %arg1: i32, %arg2: memref<16x128xbf16, #tpu.memory_space<vmem>>, %arg3: memref<128x128xbf16, #tpu.memory_space<vmem>>, %arg4: memref<16x1xi32, #tpu.memory_space<vmem>>, %arg5: memref<16x128xf32, #tpu.memory_space<vmem>>, %arg6: memref<16x1xf32, #tpu.memory_space<vmem>>, %arg7: memref<16x1xf32, #tpu.memory_space<vmem>>, %arg8: memref<16x1xf32, #tpu.memory_space<vmem>>, %arg9: memref<16x1xf32, #tpu.memory_space<vmem>>) attributes {dimension_semantics = [#tpu.dimension_semantics<parallel>, #tpu.dimension_semantics<arbitrary>], iteration_bounds = array<i64: 1, 1>, scalar_prefetch = 0 : i64, scratch_operands = 3 : i64, tpu.core_type = #tpu.core_type<tc>, window_params = [{transform_indices = @transform_0, window_bounds = array<i64: 16, 128>}, {transform_indices = @transform_1, window_bounds = array<i64: 128, 128>}, {transform_indices = @transform_2, window_bounds = array<i64: 16, 1>}, {transform_indices = @transform_3, window_bounds = array<i64: 16, 128>}, {transform_indices = @transform_4, window_bounds = array<i64: 16, 1>}]} {
    %c0_i32 = arith.constant 0 : i32
    %0 = arith.cmpi eq, %arg1, %c0_i32 : i32
    %1 = arith.extui %0 : i1 to i32
    %c0_i32_0 = arith.constant 0 : i32
    %2 = arith.cmpi ne, %1, %c0_i32_0 : i32
    scf.if %2 {
      %cst_31 = arith.constant -1.000000e+30 : f32
      %51 = vector.broadcast %cst_31 : f32 to vector<16x1xf32>
      %c0_32 = arith.constant 0 : index
      %c0_33 = arith.constant 0 : index
      %52 = vector.load %arg7[%c0_32, %c0_33] : memref<16x1xf32, #tpu.memory_space<vmem>>, vector<16x1xf32>
      tpu.vector_store %arg7[%c0_32, %c0_33], %51 {strides = array<i32>} : memref<16x1xf32, #tpu.memory_space<vmem>>, vector<16x1xf32>,
      %cst_34 = arith.constant 0.000000e+00 : f32
      %53 = vector.broadcast %cst_34 : f32 to vector<16x1xf32>
      %c0_35 = arith.constant 0 : index
      %c0_36 = arith.constant 0 : index
      %54 = vector.load %arg8[%c0_35, %c0_36] : memref<16x1xf32, #tpu.memory_space<vmem>>, vector<16x1xf32>
      tpu.vector_store %arg8[%c0_35, %c0_36], %53 {strides = array<i32>} : memref<16x1xf32, #tpu.memory_space<vmem>>, vector<16x1xf32>,
      %cst_37 = arith.constant 0.000000e+00 : f32
      %55 = vector.broadcast %cst_37 : f32 to vector<16x1xf32>
      %c0_38 = arith.constant 0 : index
      %c0_39 = arith.constant 0 : index
      %56 = vector.load %arg9[%c0_38, %c0_39] : memref<16x1xf32, #tpu.memory_space<vmem>>, vector<16x1xf32>
      tpu.vector_store %arg9[%c0_38, %c0_39], %55 {strides = array<i32>} : memref<16x1xf32, #tpu.memory_space<vmem>>, vector<16x1xf32>,
    } else {
    }
    %c0 = arith.constant 0 : index
    %c0_1 = arith.constant 0 : index
    %3 = vector.load %arg2[%c0, %c0_1] : memref<16x128xbf16, #tpu.memory_space<vmem>>, vector<16x128xbf16>
    %c0_2 = arith.constant 0 : index
    %c0_3 = arith.constant 0 : index
    %4 = vector.load %arg3[%c0_2, %c0_3] : memref<128x128xbf16, #tpu.memory_space<vmem>>, vector<128x128xbf16>
    %cst = arith.constant dense<0.000000e+00> : vector<16x128xf32>
    %5 = tpu.matmul %3, %4, %cst {dimension_numbers = #tpu.dot_dimension_numbers<[1], [1], [0], [0], [0, 0, 1, 0], [], []>} : vector<16x128xbf16>, vector<128x128xbf16>, vector<16x128xf32> -> vector<16x128xf32>
    %6 = tpu.iota {dimensions = array<i32: 1>} : vector<16x128xi32>
    %c128_i32 = arith.constant 128 : i32
    %7 = arith.muli %arg1, %c128_i32 : i32
    %8 = vector.broadcast %7 : i32 to vector<16x128xi32>
    %9 = arith.addi %6, %8 : vector<16x128xi32>
    %c16_i32 = arith.constant 16 : i32
    %10 = vector.broadcast %c16_i32 : i32 to vector<16x128xi32>
    %11 = arith.cmpi slt, %9, %10 : vector<16x128xi32>
    %cst_4 = arith.constant -1.000000e+30 : f32
    %12 = vector.broadcast %cst_4 : f32 to vector<16x128xf32>
    %13 = arith.select %11, %5, %12 : vector<16x128xi1>, vector<16x128xf32>
    %c0_5 = arith.constant 0 : index
    %c0_6 = arith.constant 0 : index
    %14 = vector.load %arg7[%c0_5, %c0_6] : memref<16x1xf32, #tpu.memory_space<vmem>>, vector<16x1xf32>
    %cst_7 = arith.constant dense<0xFF800000> : vector<16xf32>
    %15 = vector.multi_reduction <maximumf>, %13, %cst_7 [1] : vector<16x128xf32> to vector<16xf32>
    %16 = vector.shape_cast %15 : vector<16xf32> to vector<16x1xf32>
    %17 = arith.maximumf %14, %16 : vector<16x1xf32>
    %18 = arith.subf %14, %17 : vector<16x1xf32>
    %19 = math.exp %18 : vector<16x1xf32>
    %20 = vector.broadcast %17 : vector<16x1xf32> to vector<16x128xf32>
    %21 = arith.subf %13, %20 : vector<16x128xf32>
    %22 = math.exp %21 : vector<16x128xf32>
    %c0_8 = arith.constant 0 : index
    %c0_9 = arith.constant 0 : index
    %23 = vector.load %arg8[%c0_8, %c0_9] : memref<16x1xf32, #tpu.memory_space<vmem>>, vector<16x1xf32>
    %24 = arith.mulf %19, %23 : vector<16x1xf32>
    %cst_10 = arith.constant dense<0.000000e+00> : vector<16xf32>
    %25 = vector.multi_reduction <add>, %22, %cst_10 [1] : vector<16x128xf32> to vector<16xf32>
    %26 = vector.shape_cast %25 : vector<16xf32> to vector<16x1xf32>
    %27 = arith.addf %24, %26 : vector<16x1xf32>
    %c0_11 = arith.constant 0 : index
    %c0_12 = arith.constant 0 : index
    %28 = vector.load %arg8[%c0_11, %c0_12] : memref<16x1xf32, #tpu.memory_space<vmem>>, vector<16x1xf32>
    tpu.vector_store %arg8[%c0_11, %c0_12], %27 {strides = array<i32>} : memref<16x1xf32, #tpu.memory_space<vmem>>, vector<16x1xf32>,
    %c0_13 = arith.constant 0 : index
    %c0_14 = arith.constant 0 : index
    %29 = vector.load %arg7[%c0_13, %c0_14] : memref<16x1xf32, #tpu.memory_space<vmem>>, vector<16x1xf32>
    tpu.vector_store %arg7[%c0_13, %c0_14], %17 {strides = array<i32>} : memref<16x1xf32, #tpu.memory_space<vmem>>, vector<16x1xf32>,
    %c0_15 = arith.constant 0 : index
    %c0_16 = arith.constant 0 : index
    %30 = vector.load %arg9[%c0_15, %c0_16] : memref<16x1xf32, #tpu.memory_space<vmem>>, vector<16x1xf32>
    %c0_17 = arith.constant 0 : index
    %c0_18 = arith.constant 0 : index
    %31 = vector.load %arg4[%c0_17, %c0_18] : memref<16x1xi32, #tpu.memory_space<vmem>>, vector<16x1xi32>
    %32 = vector.broadcast %31 : vector<16x1xi32> to vector<16x128xi32>
    %33 = arith.cmpi eq, %9, %32 : vector<16x128xi32>
    %cst_19 = arith.constant 0.000000e+00 : f32
    %34 = vector.broadcast %cst_19 : f32 to vector<16x128xf32>
    %35 = arith.select %33, %13, %34 : vector<16x128xi1>, vector<16x128xf32>
    %cst_20 = arith.constant dense<0.000000e+00> : vector<16xf32>
    %36 = vector.multi_reduction <add>, %35, %cst_20 [1] : vector<16x128xf32> to vector<16xf32>
    %37 = vector.shape_cast %36 : vector<16xf32> to vector<16x1xf32>
    %38 = arith.addf %30, %37 : vector<16x1xf32>
    %c0_21 = arith.constant 0 : index
    %c0_22 = arith.constant 0 : index
    %39 = vector.load %arg9[%c0_21, %c0_22] : memref<16x1xf32, #tpu.memory_space<vmem>>, vector<16x1xf32>
    tpu.vector_store %arg9[%c0_21, %c0_22], %38 {strides = array<i32>} : memref<16x1xf32, #tpu.memory_space<vmem>>, vector<16x1xf32>,
    %c0_23 = arith.constant 0 : index
    %c0_24 = arith.constant 0 : index
    %40 = vector.load %arg5[%c0_23, %c0_24] : memref<16x128xf32, #tpu.memory_space<vmem>>, vector<16x128xf32>
    %41 = vector.broadcast %19 : vector<16x1xf32> to vector<16x128xf32>
    %42 = arith.mulf %40, %41 : vector<16x128xf32>
    %c0_25 = arith.constant 0 : index
    %c0_26 = arith.constant 0 : index
    %43 = vector.load %arg5[%c0_25, %c0_26] : memref<16x128xf32, #tpu.memory_space<vmem>>, vector<16x128xf32>
    tpu.vector_store %arg5[%c0_25, %c0_26], %42 {strides = array<i32>} : memref<16x128xf32, #tpu.memory_space<vmem>>, vector<16x128xf32>,
    %c128_i32_27 = arith.constant 128 : i32
    %44 = arith.muli %arg1, %c128_i32_27 : i32
    %45 = tpu.assume_multiple %44, 128 : i32
    %c0_28 = arith.constant 0 : index
    %46 = arith.index_cast %45 : i32 to index
    %47 = vector.load %arg5[%c0_28, %46] : memref<16x128xf32, #tpu.memory_space<vmem>>, vector<16x128xf32>
    tpu.vector_store %arg5[%c0_28, %46], %22 {strides = array<i32>} : memref<16x128xf32, #tpu.memory_space<vmem>>, vector<16x128xf32>,
    %c0_i32_29 = arith.constant 0 : i32
    %48 = arith.cmpi eq, %arg1, %c0_i32_29 : i32
    %49 = arith.extui %48 : i1 to i32
    %c0_i32_30 = arith.constant 0 : i32
    %50 = arith.cmpi ne, %49, %c0_i32_30 : i32
    scf.if %50 {
      %c0_31 = arith.constant 0 : index
      %c0_32 = arith.constant 0 : index
      %51 = vector.load %arg8[%c0_31, %c0_32] : memref<16x1xf32, #tpu.memory_space<vmem>>, vector<16x1xf32>
      %52 = tpu.reciprocal %51 {approx = true} : vector<16x1xf32> -> vector<16x1xf32>
      %53 = arith.mulf %51, %52 : vector<16x1xf32>
      %cst_33 = arith.constant 2.000000e+00 : f32
      %54 = vector.broadcast %cst_33 : f32 to vector<16x1xf32>
      %55 = arith.subf %54, %53 : vector<16x1xf32>
      %56 = arith.mulf %52, %55 : vector<16x1xf32>
      %c0_34 = arith.constant 0 : index
      %c0_35 = arith.constant 0 : index
      %57 = vector.load %arg5[%c0_34, %c0_35] : memref<16x128xf32, #tpu.memory_space<vmem>>, vector<16x128xf32>
      %58 = vector.broadcast %56 : vector<16x1xf32> to vector<16x128xf32>
      %59 = arith.mulf %57, %58 : vector<16x128xf32>
      %c0_36 = arith.constant 0 : index
      %c0_37 = arith.constant 0 : index
      %60 = vector.load %arg5[%c0_36, %c0_37] : memref<16x128xf32, #tpu.memory_space<vmem>>, vector<16x128xf32>
      tpu.vector_store %arg5[%c0_36, %c0_37], %59 {strides = array<i32>} : memref<16x128xf32, #tpu.memory_space<vmem>>, vector<16x128xf32>,
      %c0_38 = arith.constant 0 : index
      %c0_39 = arith.constant 0 : index
      %61 = vector.load %arg7[%c0_38, %c0_39] : memref<16x1xf32, #tpu.memory_space<vmem>>, vector<16x1xf32>
      %62 = math.log %51 : vector<16x1xf32>
      %63 = arith.addf %61, %62 : vector<16x1xf32>
      %c0_40 = arith.constant 0 : index
      %c0_41 = arith.constant 0 : index
      %64 = vector.load %arg9[%c0_40, %c0_41] : memref<16x1xf32, #tpu.memory_space<vmem>>, vector<16x1xf32>
      %65 = arith.subf %63, %64 : vector<16x1xf32>
      %c0_42 = arith.constant 0 : index
      %c0_43 = arith.constant 0 : index
      %66 = vector.load %arg6[%c0_42, %c0_43] : memref<16x1xf32, #tpu.memory_space<vmem>>, vector<16x1xf32>
      tpu.vector_store %arg6[%c0_42, %c0_43], %65 {strides = array<i32>} : memref<16x1xf32, #tpu.memory_space<vmem>>, vector<16x1xf32>,
    } else {
    }
    return
  }
  func.func @transform_0(%arg0: i32, %arg1: i32) -> (i32, i32) {
    %c0_i32 = arith.constant 0 : i32
    %c0_i32_0 = arith.constant 0 : i32
    return %arg0, %c0_i32 : i32, i32
  }
  func.func @transform_1(%arg0: i32, %arg1: i32) -> (i32, i32) {
    %c0_i32 = arith.constant 0 : i32
    %c0_i32_0 = arith.constant 0 : i32
    return %arg1, %c0_i32 : i32, i32
  }
  func.func @transform_2(%arg0: i32, %arg1: i32) -> (i32, i32) {
    %c0_i32 = arith.constant 0 : i32
    %c0_i32_0 = arith.constant 0 : i32
    return %arg0, %c0_i32 : i32, i32
  }
  func.func @transform_3(%arg0: i32, %arg1: i32) -> (i32, i32) {
    %c0_i32 = arith.constant 0 : i32
    %c0_i32_0 = arith.constant 0 : i32
    return %arg0, %c0_i32 : i32, i32
  }
  func.func @transform_4(%arg0: i32, %arg1: i32) -> (i32, i32) {
    %c0_i32 = arith.constant 0 : i32
    %c0_i32_0 = arith.constant 0 : i32
    return %arg0, %c0_i32 : i32, i32
  }
}

</mosaic_0001>

<bundles_post_ra>
// kernel: tpu_custom_call.1
= control target key start
LH: loop header
LB: loop body
LE: loop exit
PB: predicated region body
PF: predicated region fallthrough
CT: control target
= control target key end

     0   :  { %10 = vsyncpa [#allocation6], 0  ;;  %s695_s0 = inlined_call_operand.hbm [shape: bf16[16,128], index: 0, kind: input, shape index: {}]   ;;  %s696_s1 = inlined_call_operand.hbm [shape: bf16[128,128], index: 1, kind: input, shape index: {}]   ;;  %s697_s2 = inlined_call_operand.hbm [shape: s32[16,1], index: 2, kind: input, shape index: {}]   ;;  %s698_s3 = inlined_call_operand.hbm [shape: f32[16,128], index: 3, kind: output, shape index: {0}]   ;;  %s699_s4 = inlined_call_operand.hbm [shape: f32[16,1], index: 4, kind: output, shape index: {1}]  }
   0x1   :  { %11 = vsyncpa [#allocation9], 0 }
   0x2   :  { %12 = vsyncpa [#allocation7], 0 }
   0x3   :  { %13 = vsyncpa [#allocation13], 0  ;;  %s554_s15 = smov [#allocation8]   ;;  %s555_s17 = smov [#allocation5]  }
   0x4   :  { %s31_s16 = sshll.u32 %s554_s15, 4  ;;  %s19_s18 = sshll.u32 %s555_s17, 4  ;;  %s32_s16 = int_to_ptr.vmem [resolvable:$true] %s31_s16  ;;  %s592_s18 = int_to_ptr.vmem [resolvable:$true] %s19_s18 }
   0x5   :  { %s436_s21 = scalar_lea.hbm %s696_s1, 1024 }
   0x6   :  { %p437_p0 = scmp.ne.s32.totalorder %s696_s1, %s436_s21  ;;  %p440_p1 = scmp.lt.u32.totalorder %s436_s21, %s696_s1 }
   0x8   :  { %p442_p2 = pnand %p440_p1, %p437_p0 }
   0xa   :  { %445 = shalt.err (!%p442_p2)
}
   0xb   :  { %s446_s26 = scalar_lea.vmem %s32_s16, 1024  ;;  %p451_p4 = scmp.lt.s32.totalorder %s32_s16, %s32_s16 }
   0xc   :  { %p447_p3 = scmp.ne.s32.totalorder %s32_s16, %s446_s26  ;;  %p452_p5 = scmp.lt.s32.totalorder %s446_s26, %s446_s26 }
   0xe   :  { %p453_p6 = por %p452_p5, %p451_p4 }
  0x10   :  { %p454_p7 = pnand %p453_p6, %p447_p3 }
  0x12   :  { %457 = shalt.err (!%p454_p7)
}
  0x13   :  { %s556_s27 = smov 64   ;;  %s557_s28 = smov 4  }
  0x14   :  { %37 = dma.hbm_to_vmem [thread:$0]  %s696_s1, 1024, %s32_s16, [#allocation9], %s556_s27, %s556_s27, %s557_s28  }
  0x15   :  { %s458_s7 = scalar_lea.hbm %s695_s0, 128 }
  0x16   :  { %p459_p8 = scmp.ne.s32.totalorder %s695_s0, %s458_s7  ;;  %p462_p9 = scmp.lt.u32.totalorder %s458_s7, %s695_s0 }
  0x18   :  { %p464_p10 = pnand %p462_p9, %p459_p8 }
  0x1a   :  { %467 = shalt.err (!%p464_p10)
}
  0x1b   :  { %s468_s12 = scalar_lea.vmem %s592_s18, 128  ;;  %p473_p12 = scmp.lt.s32.totalorder %s592_s18, %s592_s18 }
  0x1c   :  { %p469_p11 = scmp.ne.s32.totalorder %s592_s18, %s468_s12  ;;  %p474_p13 = scmp.lt.s32.totalorder %s468_s12, %s468_s12 }
  0x1e   :  { %p475_p0 = por %p474_p13, %p473_p12 }
  0x20   :  { %p476_p1 = pnand %p475_p0, %p469_p11 }
  0x22   :  { %479 = shalt.err (!%p476_p1)
}
  0x23   :  { %25 = dma.hbm_to_vmem [thread:$0]  %s695_s0, 128, %s592_s18, [#allocation6], %s556_s27, %s556_s27, %s557_s28  }
  0x24   :  { %s558_s14 = smov [#allocation10]   ;;  %s480_s19 = scalar_lea.hbm %s697_s2, 256 }
  0x25   :  { %s43_s15 = sshll.u32 %s558_s14, 4  ;;  %p481_p2 = scmp.ne.s32.totalorder %s697_s2, %s480_s19  ;;  %s44_s15 = int_to_ptr.vmem [resolvable:$true] %s43_s15 }
  0x26   :  { %p484_p3 = scmp.lt.u32.totalorder %s480_s19, %s697_s2 }
  0x28   :  { %p486_p4 = pnand %p484_p3, %p481_p2 }
  0x2a   :  { %489 = shalt.err (!%p486_p4)
}
  0x2b   :  { %s490_s24 = scalar_lea.vmem %s44_s15, 256  ;;  %p495_p6 = scmp.lt.s32.totalorder %s44_s15, %s44_s15 }
  0x2c   :  { %p491_p5 = scmp.ne.s32.totalorder %s44_s15, %s490_s24  ;;  %p496_p7 = scmp.lt.s32.totalorder %s490_s24, %s490_s24 }
  0x2e   :  { %p497_p8 = por %p496_p7, %p495_p6 }
  0x30   :  { %p498_p9 = pnand %p497_p8, %p491_p5 }
  0x32   :  { %501 = shalt.err (!%p498_p9)
}
  0x33   :  { %s559_s0 = smov 128   ;;  %s560_s18 = smov 8  }
  0x34   :  { %49 = dma.hbm_to_vmem [thread:$0]  %s697_s2, 256, %s44_s15, [#allocation9], %s559_s0, %s559_s0, %s560_s18  }
  0x35   :  { %546 = dma.done.wait [#allocation6], 128  }
  0x36   :  { %547 = vsyncadd [#allocation6], 4294967168 }
  0x37   :  { %548 = dma.done.wait [#allocation9], 1280  }
  0x38   :  { %549 = vsyncadd [#allocation9], 4294966016  ;;  %v561_v0 = vmov 0.0   ;;  %vm562_vm0 = vmmov 0   ;;  %v411_v1 = vld [vmem:[#allocation8] sm:$0xff]   ;;  %v412_v2 = vld [vmem:[#allocation8 + $0x8] sm:$0xff]   ;;  %v184_v11 = vlaneseq }
  0x39   :  { %376 = vmatprep.subr.bf16.mxu0 %v561_v0  ;;  %392 = vmatprep.mubr.msk.bf16.mxu0 %vm562_vm0, %v561_v0  ;;  %v413_v3 = vld [vmem:[#allocation8 + $0x10] sm:$0xff]   ;;  %v414_v4 = vld [vmem:[#allocation8 + $0x18] sm:$0xff]   ;;  %v415_v5 = vld [vmem:[#allocation8 + $0x20] sm:$0xff]   ;;  %vm64_vm1 = vcmask 7168   ;;  %v563_v10 = vmov -1e+30  }
  0x3a   :  { %377 = vmatpush3.bf16.xpose.msra.mxu0 %v411_v1  ;;  %v416_v6 = vld [vmem:[#allocation8 + $0x28] sm:$0xff]   ;;  %v417_v7 = vld [vmem:[#allocation8 + $0x30] sm:$0xff]   ;;  %v418_v8 = vld [vmem:[#allocation8 + $0x38] sm:$0xff]   ;;  %65 = vst.msk [vmem:[#allocation2] sm:$0xff] %vm64_vm1, %v563_v10  ;;  %v644_v12 = vand.u32 127, %v184_v11  ;;  %v564_v19 = vmov 0  }
  0x3b   :  { %378 = vmatprep.subr.bf16.mxu0 %v561_v0  ;;  %v419_v9 = vld [vmem:[#allocation5] sm:$0xff]   ;;  %66 = vst.msk [vmem:[#allocation2 + $0x8] sm:$0xff] %vm64_vm1, %v563_v10  ;;  %67 = vst.msk [vmem:[#allocation3] sm:$0xff] %vm64_vm1, %v561_v0  ;;  %409 = vset.pattern.permute.xlu1 %v564_v19  ;;  %v240_v36 = vld [vmem:[#allocation10 + $0x8] sm:$0xff]  ;;  %s565_s2 = smov [#allocation12]   ;;  %s566_s28 = smov [#allocation11]  }
  0x3c   :  { %68 = vst.msk [vmem:[#allocation3 + $0x8] sm:$0xff] %vm64_vm1, %v561_v0  ;;  %69 = vst.msk [vmem:[#allocation4] sm:$0xff] %vm64_vm1, %v561_v0  ;;  %vm189_vm2 = vcmp.lt.s32.totalorder %v644_v12, 16  ;;  %410 = vset.pattern.permute.xlu0 %v564_v19  ;;  %v239_v37 = vld [vmem:[#allocation10] sm:$0xff]  ;;  %s340_s27 = sshll.u32 %s565_s2, 4  ;;  %s328_s29 = sshll.u32 %s566_s28, 4  ;;  %s341_s27 = int_to_ptr.vmem [resolvable:$true] %s340_s27  ;;  %s329_s29 = int_to_ptr.vmem [resolvable:$true] %s328_s29 }
  0x3d   :  { %70 = vst.msk [vmem:[#allocation4 + $0x8] sm:$0xff] %vm64_vm1, %v561_v0  ;;  %s502_s30 = scalar_lea.vmem %s341_s27, 256  ;;  %p507_p11 = scmp.lt.s32.totalorder %s341_s27, %s341_s27 }
  0x3e   :  { %p503_p10 = scmp.ne.s32.totalorder %s341_s27, %s502_s30  ;;  %p508_p12 = scmp.lt.s32.totalorder %s502_s30, %s502_s30 }
  0x40   :  { %p509_p13 = por %p508_p12, %p507_p11 }
  0x41   :  { %v192_v20 = vld [vmem:[#allocation2] sm:$0xff] }
  0x42   :  { %379 = vmatpush3.bf16.xpose.msra.mxu0 %v412_v2  ;;  %v193_v23 = vld [vmem:[#allocation2 + $0x8] sm:$0xff]  ;;  %v222_v41 = vld [vmem:[#allocation3] sm:$0xff]  ;;  %p510_p0 = pnand %p509_p13, %p503_p10 }
  0x43   :  { %380 = vmatprep.subr.bf16.mxu0 %v561_v0  ;;  %v223_v45 = vld [vmem:[#allocation3 + $0x8] sm:$0xff] }
  0x44   :  { %v238_v1 = vld [vmem:[#allocation4 + $0x8] sm:$0xff] }
  0x4a   :  { %381 = vmatpush3.bf16.xpose.msra.mxu0 %v413_v3 }
  0x4b   :  { %382 = vmatprep.subr.bf16.mxu0 %v561_v0 }
  0x52   :  { %383 = vmatpush3.bf16.xpose.msra.mxu0 %v414_v4 }
  0x53   :  { %384 = vmatprep.subr.bf16.mxu0 %v561_v0 }
  0x5a   :  { %385 = vmatpush3.bf16.xpose.msra.mxu0 %v415_v5 }
  0x5b   :  { %386 = vmatprep.subr.bf16.mxu0 %v561_v0 }
  0x62   :  { %387 = vmatpush3.bf16.xpose.msra.mxu0 %v416_v6 }
  0x63   :  { %388 = vmatprep.subr.bf16.mxu0 %v561_v0 }
  0x6a   :  { %389 = vmatpush3.bf16.xpose.msra.mxu0 %v417_v7 }
  0x6b   :  { %390 = vmatprep.subr.bf16.mxu0 %v561_v0  ;;  %v237_v0 = vld [vmem:[#allocation4] sm:$0xff] }
  0x72   :  { %391 = vmatpush3.bf16.xpose.msra.mxu0 %v418_v8 }
  0x79   :  { %393 = vmatmul.mubr.bf16.vlgmr.msra.gmra.mrb[0].mxu0 %v419_v9 }
 0x14c   :  { %v177_v13 = vpop.f32.mrb[0].mxu0 }
 0x14d   :  { %v190_v14 = vsel %vm189_vm2, %v177_v13, -1e+30  ;;  %v394_v15 = vpop.f32.mrb[1].mxu0 }
 0x14e   :  { %194 = vmax.xlane.f32.xlu0 %v190_v14  ;;  %v180_v16 = vpop.f32.mrb[2].mxu0 }
 0x14f   :  { %v395_v17 = vpop.f32.mrb[3].mxu0  ;;  %v191_v18 = vsel %vm189_vm2, %v180_v16, -1e+30 }
 0x152   :  { %196 = vmax.xlane.f32.xlu0 %v191_v18 }
 0x1db   :  { %v195_v21 = vpop.xlane.xlu0 %194 }
 0x1dc   :  { %v198_v22 = vmax.f32 %v192_v20, %v195_v21 }
 0x1de   :  { %v200_v24 = vsub.f32 %v192_v20, %v198_v22  ;;  %235 = vst.msk [vmem:[#allocation2] sm:$0xff] %vm64_vm1, %v198_v22  ;;  %208 = vperm.xlu1 %409, %v198_v22  }
 0x1df   :  { %v197_v25 = vpop.xlane.xlu0 %196 }
 0x1e0   :  { %v199_v26 = vmax.f32 %v193_v23, %v197_v25  ;;  %v202_v38 = vmul.f32 1.442695, %v200_v24 }
 0x1e2   :  { %v201_v27 = vsub.f32 %v193_v23, %v199_v26  ;;  %236 = vst.msk [vmem:[#allocation2 + $0x8] sm:$0xff] %vm64_vm1, %v199_v26  ;;  %213 = vperm.xlu1 %409, %v199_v26  }
 0x1e4   :  { %v204_v39 = vmul.f32 1.442695, %v201_v27 }
 0x1e9   :  { %v310_v13 = vld [vmem:[#allocation2 + $0x8] sm:$0xff] }
 0x25d   :  { %v209_v28 = vpop.permute.xlu1 %208 }
 0x25e   :  { %v216_v29 = vsub.f32 %v190_v14, %v209_v28 }
 0x260   :  { %v218_v30 = vmul.f32 1.442695, %v216_v29 }
 0x261   :  { %v214_v31 = vpop.permute.xlu1 %213 }
 0x262   :  { %420 = vpow2.f32 %v218_v30  ;;  %v217_v32 = vsub.f32 %v191_v18, %v214_v31 }
 0x264   :  { %v220_v33 = vmul.f32 1.442695, %v217_v32 }
 0x266   :  { %422 = vpow2.f32 %v220_v33 }
 0x267   :  { %424 = vpow2.f32 %v202_v38 }
 0x268   :  { %426 = vpow2.f32 %v204_v39 }
 0x26c   :  { %v649_v34 = vpop.eup %420 }
 0x26d   :  { %226 = vadd.xlane.f32.xlu0 %v649_v34 }
 0x270   :  { %v652_v35 = vpop.eup %422 }
 0x271   :  { %228 = vadd.xlane.f32.xlu1 %v652_v35  ;;  %v425_v40 = vpop.eup %424 }
 0x272   :  { %v224_v42 = vmul.f32 %v425_v40, %v222_v41  ;;  %v427_v43 = vpop.eup %426 }
 0x273   :  { %v225_v47 = vmul.f32 %v427_v43, %v223_v45 }
 0x282   :  { %245 = vperm.xlu1 %409, %v240_v36  }
 0x283   :  { %242 = vperm.xlu0 %410, %v239_v37  }
 0x2fa   :  { %v227_v44 = vpop.xlane.xlu0 %226 }
 0x2fb   :  { %v230_v46 = vadd.f32 %v227_v44, %v224_v42 }
 0x2fd   :  { %233 = vst.msk [vmem:[#allocation3] sm:$0xff] %vm64_vm1, %v230_v46 }
 0x2fe   :  { %v229_v48 = vpop.xlane.xlu1 %228 }
 0x2ff   :  { %v231_v49 = vadd.f32 %v229_v48, %v225_v47 }
 0x301   :  { %234 = vst.msk [vmem:[#allocation3 + $0x8] sm:$0xff] %vm64_vm1, %v231_v49 }
 0x302   :  { %v243_v50 = vpop.permute.xlu0 %242  ;;  %v246_v51 = vpop.permute.xlu1 %245 }
 0x303   :  { %vm247_vm3 = vcmp.eq.s32.totalorder %v644_v12, %v243_v50  ;;  %vm248_vm4 = vcmp.eq.s32.totalorder %v644_v12, %v246_v51  ;;  %v309_v12 = vld [vmem:[#allocation2] sm:$0xff] }
 0x304   :  { %v249_v52 = vsel %vm247_vm3, %v190_v14, 0.0  ;;  %v250_v53 = vsel %vm248_vm4, %v191_v18, 0.0  ;;  %v283_v54 = vld [vmem:[#allocation3] sm:$0xff] }
 0x305   :  { %251 = vadd.xlane.f32.xlu0 %v249_v52  ;;  %253 = vadd.xlane.f32.xlu1 %v250_v53  ;;  %428 = vrcp.f32 %v283_v54 }
 0x308   :  { %v284_v55 = vld [vmem:[#allocation3 + $0x8] sm:$0xff] }
 0x309   :  { %430 = vrcp.f32 %v284_v55 }
 0x30a   :  { %432 = vlog2.f32 %v283_v54 }
 0x30b   :  { %434 = vlog2.f32 %v284_v55 }
 0x30f   :  { %v429_v56 = vpop.eup %428 }
 0x310   :  { %v287_v57 = vmul.f32 %v429_v56, %v283_v54 }
 0x312   :  { %v289_v59 = vsub.f32 2.0, %v287_v57 }
 0x313   :  { %v431_v58 = vpop.eup %430 }
 0x314   :  { %v288_v60 = vmul.f32 %v431_v58, %v284_v55  ;;  %v291_v61 = vmul.f32 %v429_v56, %v289_v59  ;;  %v433_v4 = vpop.eup %432 }
 0x315   :  { %v435_v7 = vpop.eup %434  ;;  %v312_v9 = vmul.f32 0.6931472, %v433_v4 }
 0x316   :  { %268 = vperm.xlu1 %409, %v427_v43   ;;  %v290_v62 = vsub.f32 2.0, %v288_v60  ;;  %v314_v10 = vmul.f32 0.6931472, %v435_v7 }
 0x317   :  { %v315_v14 = vadd.f32 %v312_v9, %v309_v12 }
 0x318   :  { %v292_v63 = vmul.f32 %v431_v58, %v290_v62  ;;  %v316_v15 = vadd.f32 %v314_v10, %v310_v13 }
 0x31b   :  { %263 = vperm.xlu0 %410, %v425_v40  }
 0x31f   :  { %297 = vperm.xlu0 %410, %v291_v61  }
 0x323   :  { %302 = vperm.xlu0 %410, %v292_v63  }
 0x392   :  { %v252_v2 = vpop.xlane.xlu0 %251  ;;  %v254_v3 = vpop.xlane.xlu1 %253 }
 0x393   :  { %v255_v5 = vadd.f32 %v252_v2, %v237_v0  ;;  %v256_v6 = vadd.f32 %v254_v3, %v238_v1 }
 0x395   :  { %257 = vst.msk [vmem:[#allocation4] sm:$0xff] %vm64_vm1, %v255_v5  ;;  %258 = vst.msk [vmem:[#allocation4 + $0x8] sm:$0xff] %vm64_vm1, %v256_v6 }
 0x396   :  { %v269_v8 = vpop.permute.xlu1 %268 }
 0x39a   :  { %v264_v11 = vpop.permute.xlu0 %263 }
 0x39c   :  { %v317_v16 = vld [vmem:[#allocation4] sm:$0xff]  ;;  %v318_v17 = vld [vmem:[#allocation4 + $0x8] sm:$0xff] }
 0x39d   :  { %v319_v18 = vsub.f32 %v315_v14, %v317_v16  ;;  %v320_v19 = vsub.f32 %v316_v15, %v318_v17 }
 0x39e   :  { %v298_v20 = vpop.permute.xlu0 %297 }
 0x39f   :  { %v305_v21 = vmul.f32 %v649_v34, %v298_v20  ;;  %321 = vst.msk [vmem:[#allocation12] sm:$0xff] %vm64_vm1, %v319_v18  ;;  %322 = vst.msk [vmem:[#allocation12 + $0x8] sm:$0xff] %vm64_vm1, %v320_v19 }
 0x3a0   :  { %513 = shalt.err (!%p510_p0)
}
 0x3a1   :  { %s514_s7 = scalar_lea.hbm %s699_s4, 256 }
 0x3a2   :  { %p515_p1 = scmp.ne.s32.totalorder %s699_s4, %s514_s7  ;;  %p518_p2 = scmp.lt.u32.totalorder %s514_s7, %s699_s4 }
 0x3a4   :  { %p520_p3 = pnand %p518_p2, %p515_p1 }
 0x3a6   :  { %523 = shalt.err (!%p520_p3)
}
 0x3a7   :  { %346 = dma.vmem_to_hbm [thread:$0]  %s341_s27, 256, %s699_s4, [#allocation13], %s559_s0, %s559_s0, %s560_s18   ;;  %307 = vst [vmem:[#allocation11] sm:$0xff] %v305_v21  ;;  %v303_v22 = vpop.permute.xlu0 %302 }
 0x3a8   :  { %v306_v23 = vmul.f32 %v652_v35, %v303_v22  ;;  %s524_s13 = scalar_lea.vmem %s329_s29, 256  ;;  %p529_p5 = scmp.lt.s32.totalorder %s329_s29, %s329_s29 }
 0x3a9   :  { %p525_p4 = scmp.ne.s32.totalorder %s329_s29, %s524_s13  ;;  %p530_p6 = scmp.lt.s32.totalorder %s524_s13, %s524_s13 }
 0x3aa   :  { %308 = vst [vmem:[#allocation11 + $0x8] sm:$0xff] %v306_v23 }
 0x3ab   :  { %p531_p7 = por %p530_p6, %p529_p5 }
 0x3ad   :  { %p532_p8 = pnand %p531_p7, %p525_p4 }
 0x3af   :  { %535 = shalt.err (!%p532_p8)
}
 0x3b0   :  { %s536_s16 = scalar_lea.hbm %s698_s3, 256 }
 0x3b1   :  { %p537_p9 = scmp.ne.s32.totalorder %s698_s3, %s536_s16  ;;  %p540_p10 = scmp.lt.u32.totalorder %s536_s16, %s698_s3 }
 0x3b3   :  { %p542_p11 = pnand %p540_p10, %p537_p9 }
 0x3b5   :  { %545 = shalt.err (!%p542_p11)
}
 0x3b6   :  { %334 = dma.vmem_to_hbm [thread:$0]  %s329_s29, 256, %s698_s3, [#allocation7], %s559_s0, %s559_s0, %s560_s18  }
 0x3b7   :  { %550 = dma.done.wait [#allocation7], 256  }
 0x3b8   :  { %551 = vsyncadd [#allocation7], 4294967040 }
 0x3b9   :  { %552 = dma.done.wait [#allocation13], 256  }
 0x3ba   :  { %553 = vsyncadd [#allocation13], 4294967040 }
 0x3bb   :  { %353 = vsyncpa [#allocation6], 1 }
 0x3bc   :  { %354 = vsyncpa [#allocation9], 1 }
 0x3bd   :  { %355 = vsyncpa [#allocation7], 1 }
 0x3be   :  { %356 = vsyncpa [#allocation13], 1 }

</bundles_post_ra>
